<compile_context>
chip_gen: v7x
topology: tpu7x:2x2x1
jax: 0.10.0
libtpu: 0.0.40
codegen_flags: <defaults>
</compile_context>

<pallas_src>
import jax
import jax.numpy as jnp
from jax import lax
from jax.experimental import pallas as pl
from jax.experimental.pallas import tpu as pltpu


def _slate_diversity_kernel(ids_col_ref, ids_row_ref, d_ref, out_ref, p_acc):
    """One grid step (b, r, c): accumulate the pairwise-score block for slate b.

    ids_col_ref : VMEM (1, S, 1) int32  -- slate ids, column layout
    ids_row_ref : VMEM (1, 1, S) int32  -- slate ids, row layout
    d_ref       : VMEM (TV, TV) float   -- block (r, c) of the item-item matrix
    out_ref     : VMEM (1, S, 1) float  -- per-position avg pairwise score
    p_acc       : VMEM (S, S)   f32     -- p_acc[i, j] accumulates D[id_i, id_j]
    """
    r = pl.program_id(1)
    c = pl.program_id(2)
    last_r = pl.num_programs(1) - 1
    last_c = pl.num_programs(2) - 1

    tv_r, tv_c = d_ref.shape
    s = p_acc.shape[0]

    @pl.when(jnp.logical_and(r == 0, c == 0))
    def _():
        p_acc[...] = jnp.zeros_like(p_acc)

    ids_col = ids_col_ref[0]          # (S, 1) int32
    ids_row = ids_row_ref[0]          # (1, S) int32

    # One-hot selectors built in-register (vectorized gather; no scalar loop,
    # no out-of-bounds reads for invalid ids -- they just select zero).
    onehot_rows = (lax.broadcasted_iota(jnp.int32, (s, tv_r), 1) + r * tv_r
                   == ids_col).astype(d_ref.dtype)            # (S, TV_r)
    onehot_cols = (lax.broadcasted_iota(jnp.int32, (tv_c, s), 0) + c * tv_c
                   == ids_row).astype(jnp.float32)            # (TV_c, S)

    # MXU row gather: rows[i, u] = D[id_i, c*TV_c + u] (0 if id_i not in block r).
    rows = jnp.dot(onehot_rows, d_ref[...],
                   preferred_element_type=jnp.float32)        # (S, TV_c)
    # MXU column gather: contribution[i, j] = D[id_i, id_j] within block (r, c).
    p_acc[...] += jnp.dot(rows, onehot_cols,
                          preferred_element_type=jnp.float32)  # (S, S)

    @pl.when(jnp.logical_and(r == last_r, c == last_c))
    def _():
        p = p_acc[...]                                        # p[i, j] = D[id_i, id_j]
        eye = (lax.broadcasted_iota(jnp.int32, (s, s), 0)
               == lax.broadcasted_iota(jnp.int32, (s, s), 1))
        off_diag = jnp.where(eye, 0.0, p)
        inv = 1.0 / max(s - 1, 1)
        out_ref[0] = (jnp.sum(off_diag, axis=1, keepdims=True) * inv
                      ).astype(out_ref.dtype)


def _pick_tile(v):
    # Largest lane/sublane-aligned block that divides V; tiny/irregular item
    # catalogs fall back to a single full-matrix block.
    for cand in (512, 256, 128):
        if v % cand == 0:
            return cand
    return v


def avg_pairwise_diversity_from_matrix(slate, item_item_scores):
    """out[b, i] = mean_{j != i} item_item_scores[slate[b, i], slate[b, j]]."""
    b, s = slate.shape
    v = item_item_scores.shape[0]
    assert item_item_scores.shape == (v, v)

    tv = _pick_tile(v)
    nblk = v // tv

    ids = slate.astype(jnp.int32)
    ids_col = ids.reshape(b, s, 1)
    ids_row = ids.reshape(b, 1, s)

    # TODO(synk): padding-id slots are averaged like real items (reference
    # module has no padding_idx handling either); mask downstream if needed.
    out = pl.pallas_call(
        _slate_diversity_kernel,
        out_shape=jax.ShapeDtypeStruct((b, s, 1), item_item_scores.dtype),
        grid=(b, nblk, nblk),
        in_specs=[
            pl.BlockSpec((1, s, 1), lambda bi, r, c: (bi, 0, 0)),
            pl.BlockSpec((1, 1, s), lambda bi, r, c: (bi, 0, 0)),
            pl.BlockSpec((tv, tv), lambda bi, r, c: (r, c)),
        ],
        out_specs=pl.BlockSpec((1, s, 1), lambda bi, r, c: (bi, 0, 0)),
        scratch_shapes=[pltpu.VMEM((s, s), jnp.float32)],
        compiler_params=pltpu.CompilerParams(
            dimension_semantics=("parallel", "arbitrary", "arbitrary")),
    )(ids_col, ids_row, item_item_scores)

    return out.reshape(b, s)


class SlateDiversityEncoderFromDiversities:
    """JAX/Pallas counterpart of the PyTorch module."""

    def __init__(self, slate_size, item_item_similarities):
        self.input_size = slate_size
        self.output_size = slate_size
        self.item_item_scores = jnp.asarray(item_item_similarities)

    def __call__(self, slate, *args):
        return avg_pairwise_diversity_from_matrix(slate, self.item_item_scores)


if __name__ == "__main__":
    key = jax.random.PRNGKey(0)
    k_sim, k_slate = jax.random.split(key)

    NUM_ITEMS = 64
    SLATE_SIZE = 8
    BATCH = 2

    # Symmetric item-item score matrix with zero self-score, snapped to
    # bf16-representable values so the check is exact regardless of MXU
    # f32-matmul pass decomposition.
    raw = jax.random.normal(k_sim, (NUM_ITEMS, NUM_ITEMS), dtype=jnp.float32)
    sym = 0.5 * (raw + raw.T)
    sym = sym * (1.0 - jnp.eye(NUM_ITEMS, dtype=jnp.float32))
    item_item_scores = sym.astype(jnp.bfloat16).astype(jnp.float32)

    slate = jax.random.randint(
        k_slate, (BATCH, SLATE_SIZE), 0, NUM_ITEMS, dtype=jnp.int32)

    encoder = SlateDiversityEncoderFromDiversities(SLATE_SIZE, item_item_scores)
    out = jax.block_until_ready(encoder(slate))

    # Pure-JAX reference: mean over j != i of scores[slate[i], slate[j]].
    pair = item_item_scores[slate[:, :, None], slate[:, None, :]]   # (B, S, S)
    eye = jnp.eye(SLATE_SIZE, dtype=bool)
    ref = jnp.where(eye[None], 0.0, pair).sum(-1) / (SLATE_SIZE - 1)

    assert out.shape == (BATCH, SLATE_SIZE)
    assert jnp.allclose(out, ref, atol=1e-5, rtol=1e-5), "slate diversity mismatch"

    print("KERNEL_OK")
</pallas_src>

<mosaic_0001>
module attributes {stable_mosaic.version = 11 : i64} {
  func.func @_slate_diversity_kernel(%arg0: i32, %arg1: i32, %arg2: i32, %arg3: memref<1x8x1xi32, #tpu.memory_space<vmem>>, %arg4: memref<1x1x8xi32, #tpu.memory_space<vmem>>, %arg5: memref<64x64xf32, #tpu.memory_space<vmem>>, %arg6: memref<1x8x1xf32, #tpu.memory_space<vmem>>, %arg7: memref<8x8xf32, #tpu.memory_space<vmem>>) attributes {dimension_semantics = [#tpu.dimension_semantics<parallel>, #tpu.dimension_semantics<arbitrary>, #tpu.dimension_semantics<arbitrary>], iteration_bounds = array<i64: 2, 1, 1>, scalar_prefetch = 0 : i64, scratch_operands = 1 : i64, tpu.core_type = #tpu.core_type<tc>, window_params = [{transform_indices = @transform_0, window_bounds = array<i64: 1, 8, 1>}, {transform_indices = @transform_1, window_bounds = array<i64: 1, 1, 8>}, {transform_indices = @transform_2, window_bounds = array<i64: 64, 64>}, {transform_indices = @transform_3, window_bounds = array<i64: 1, 8, 1>}]} {
    %c0_i32 = arith.constant 0 : i32
    %0 = arith.cmpi eq, %arg1, %c0_i32 : i32
    %c0_i32_0 = arith.constant 0 : i32
    %1 = arith.cmpi eq, %arg2, %c0_i32_0 : i32
    %2 = arith.andi %0, %1 : i1
    %3 = arith.extui %2 : i1 to i32
    %c0_i32_1 = arith.constant 0 : i32
    %4 = arith.cmpi ne, %3, %c0_i32_1 : i32
    scf.if %4 {
      %cst_18 = arith.constant 0.000000e+00 : f32
      %36 = vector.broadcast %cst_18 : f32 to vector<8x8xf32>
      %c0_19 = arith.constant 0 : index
      %c0_20 = arith.constant 0 : index
      %37 = vector.load %arg7[%c0_19, %c0_20] : memref<8x8xf32, #tpu.memory_space<vmem>>, vector<8x8xf32>
      tpu.vector_store %arg7[%c0_19, %c0_20], %36 {strides = array<i32>} : memref<8x8xf32, #tpu.memory_space<vmem>>, vector<8x8xf32>,
    } else {
    }
    %c0 = arith.constant 0 : index
    %c0_2 = arith.constant 0 : index
    %c0_3 = arith.constant 0 : index
    %5 = vector.load %arg3[%c0, %c0_2, %c0_3] : memref<1x8x1xi32, #tpu.memory_space<vmem>>, vector<1x8x1xi32>
    %6 = vector.shape_cast %5 : vector<1x8x1xi32> to vector<8x1xi32>
    %c0_4 = arith.constant 0 : index
    %c0_5 = arith.constant 0 : index
    %c0_6 = arith.constant 0 : index
    %7 = vector.load %arg4[%c0_4, %c0_5, %c0_6] : memref<1x1x8xi32, #tpu.memory_space<vmem>>, vector<1x1x8xi32>
    %8 = vector.shape_cast %7 : vector<1x1x8xi32> to vector<1x8xi32>
    %9 = tpu.iota {dimensions = array<i32: 1>} : vector<8x64xi32>
    %c64_i32 = arith.constant 64 : i32
    %10 = arith.muli %arg1, %c64_i32 : i32
    %11 = vector.broadcast %10 : i32 to vector<8x64xi32>
    %12 = arith.addi %9, %11 : vector<8x64xi32>
    %13 = vector.broadcast %6 : vector<8x1xi32> to vector<8x64xi32>
    %14 = arith.cmpi eq, %12, %13 : vector<8x64xi32>
    %15 = arith.extui %14 : vector<8x64xi1> to vector<8x64xi32>
    %16 = arith.sitofp %15 : vector<8x64xi32> to vector<8x64xf32>
    %17 = tpu.iota {dimensions = array<i32: 0>} : vector<64x8xi32>
    %c64_i32_7 = arith.constant 64 : i32
    %18 = arith.muli %arg2, %c64_i32_7 : i32
    %19 = vector.broadcast %18 : i32 to vector<64x8xi32>
    %20 = arith.addi %17, %19 : vector<64x8xi32>
    %21 = vector.broadcast %8 : vector<1x8xi32> to vector<64x8xi32>
    %22 = arith.cmpi eq, %20, %21 : vector<64x8xi32>
    %23 = arith.extui %22 : vector<64x8xi1> to vector<64x8xi32>
    %24 = arith.sitofp %23 : vector<64x8xi32> to vector<64x8xf32>
    %c0_8 = arith.constant 0 : index
    %c0_9 = arith.constant 0 : index
    %25 = vector.load %arg5[%c0_8, %c0_9] : memref<64x64xf32, #tpu.memory_space<vmem>>, vector<64x64xf32>
    %cst = arith.constant dense<0.000000e+00> : vector<8x64xf32>
    %26 = tpu.matmul %16, %25, %cst {dimension_numbers = #tpu.dot_dimension_numbers<[1], [0], [0], [1], [0, 0, 1, 1], [], []>} : vector<8x64xf32>, vector<64x64xf32>, vector<8x64xf32> -> vector<8x64xf32>
    %c0_10 = arith.constant 0 : index
    %c0_11 = arith.constant 0 : index
    %27 = vector.load %arg7[%c0_10, %c0_11] : memref<8x8xf32, #tpu.memory_space<vmem>>, vector<8x8xf32>
    %cst_12 = arith.constant dense<0.000000e+00> : vector<8x8xf32>
    %28 = tpu.matmul %26, %24, %cst_12 {dimension_numbers = #tpu.dot_dimension_numbers<[1], [0], [0], [1], [0, 0, 1, 1], [], []>} : vector<8x64xf32>, vector<64x8xf32>, vector<8x8xf32> -> vector<8x8xf32>
    %29 = arith.addf %27, %28 : vector<8x8xf32>
    %c0_13 = arith.constant 0 : index
    %c0_14 = arith.constant 0 : index
    %30 = vector.load %arg7[%c0_13, %c0_14] : memref<8x8xf32, #tpu.memory_space<vmem>>, vector<8x8xf32>
    tpu.vector_store %arg7[%c0_13, %c0_14], %29 {strides = array<i32>} : memref<8x8xf32, #tpu.memory_space<vmem>>, vector<8x8xf32>,
    %c0_i32_15 = arith.constant 0 : i32
    %31 = arith.cmpi eq, %arg1, %c0_i32_15 : i32
    %c0_i32_16 = arith.constant 0 : i32
    %32 = arith.cmpi eq, %arg2, %c0_i32_16 : i32
    %33 = arith.andi %31, %32 : i1
    %34 = arith.extui %33 : i1 to i32
    %c0_i32_17 = arith.constant 0 : i32
    %35 = arith.cmpi ne, %34, %c0_i32_17 : i32
    scf.if %35 {
      %c0_18 = arith.constant 0 : index
      %c0_19 = arith.constant 0 : index
      %36 = vector.load %arg7[%c0_18, %c0_19] : memref<8x8xf32, #tpu.memory_space<vmem>>, vector<8x8xf32>
      %37 = tpu.iota {dimensions = array<i32: 0>} : vector<8x8xi32>
      %38 = tpu.iota {dimensions = array<i32: 1>} : vector<8x8xi32>
      %39 = arith.cmpi eq, %37, %38 : vector<8x8xi32>
      %cst_20 = arith.constant 0.000000e+00 : f32
      %40 = vector.broadcast %cst_20 : f32 to vector<8x8xf32>
      %41 = arith.select %39, %40, %36 : vector<8x8xi1>, vector<8x8xf32>
      %cst_21 = arith.constant dense<0.000000e+00> : vector<8xf32>
      %42 = vector.multi_reduction <add>, %41, %cst_21 [1] : vector<8x8xf32> to vector<8xf32>
      %43 = vector.shape_cast %42 : vector<8xf32> to vector<8x1xf32>
      %cst_22 = arith.constant 0.142857149 : f32
      %44 = vector.broadcast %cst_22 : f32 to vector<8x1xf32>
      %45 = arith.mulf %43, %44 : vector<8x1xf32>
      %c0_23 = arith.constant 0 : index
      %c0_24 = arith.constant 0 : index
      %c0_25 = arith.constant 0 : index
      %46 = vector.load %arg6[%c0_23, %c0_24, %c0_25] : memref<1x8x1xf32, #tpu.memory_space<vmem>>, vector<1x8x1xf32>
      %47 = vector.shape_cast %46 : vector<1x8x1xf32> to vector<8x1xf32>
      %48 = vector.shape_cast %45 : vector<8x1xf32> to vector<1x8x1xf32>
      tpu.vector_store %arg6[%c0_23, %c0_24, %c0_25], %48 {strides = array<i32>} : memref<1x8x1xf32, #tpu.memory_space<vmem>>, vector<1x8x1xf32>,
    } else {
    }
    return
  }
  func.func @transform_0(%arg0: i32, %arg1: i32, %arg2: i32) -> (i32, i32, i32) {
    %c0_i32 = arith.constant 0 : i32
    %c0_i32_0 = arith.constant 0 : i32
    %c0_i32_1 = arith.constant 0 : i32
    return %arg0, %c0_i32, %c0_i32_0 : i32, i32, i32
  }
  func.func @transform_1(%arg0: i32, %arg1: i32, %arg2: i32) -> (i32, i32, i32) {
    %c0_i32 = arith.constant 0 : i32
    %c0_i32_0 = arith.constant 0 : i32
    %c0_i32_1 = arith.constant 0 : i32
    return %arg0, %c0_i32, %c0_i32_0 : i32, i32, i32
  }
  func.func @transform_2(%arg0: i32, %arg1: i32, %arg2: i32) -> (i32, i32) {
    %c0_i32 = arith.constant 0 : i32
    return %arg1, %arg2 : i32, i32
  }
  func.func @transform_3(%arg0: i32, %arg1: i32, %arg2: i32) -> (i32, i32, i32) {
    %c0_i32 = arith.constant 0 : i32
    %c0_i32_0 = arith.constant 0 : i32
    %c0_i32_1 = arith.constant 0 : i32
    return %arg0, %c0_i32, %c0_i32_0 : i32, i32, i32
  }
}

</mosaic_0001>

<bundles_post_ra>
// kernel: tpu_custom_call.1
= control target key start
LH: loop header
LB: loop body
LE: loop exit
PB: predicated region body
PF: predicated region fallthrough
CT: control target
= control target key end

     0   :  { %8 = vsyncpa [#allocation4], 0  ;;  %s792_s12 = smov 0   ;;  %s794_s13 = smov 0   ;;  %s890_s0 = inlined_call_operand.vmem [shape: s32[2,8,1], index: 0, kind: input, shape index: {}]   ;;  %s891_s1 = inlined_call_operand.vmem [shape: s32[2,1,8], index: 1, kind: input, shape index: {}]   ;;  %s892_s2 = inlined_call_operand.hbm [shape: f32[64,64], index: 2, kind: input, shape index: {}]   ;;  %s893_s3 = inlined_call_operand.vmem [shape: f32[2,8,1], index: 3, kind: output, shape index: {}]  }
   0x1   :  { %s796_s14 = smov 0  }
   0x2 LB: > { %s554_s15 = sadd.s32 4294967295, %s762_s14   ;;  %s33_s16 = sadd.s32 1, %s758_s13  ;;  %s762_s14 = sphi %s796_s14, %s14_s14   ;;  %s758_s13 = sphi %s794_s13, %s903_s13   ;;  %s754_s12 = sphi %s792_s12, %s902_s12  }
   0x3   : > { %p35_p0 = scmp.ge.s32.totalorder %s33_s16, 2  ;;  %p556_p1 = scmp.ge.s32.totalorder %s762_s14, 1 }
   0x4   : > { %p144_p2 = scmp.lt.s32.totalorder %s762_s14, 3  ;;  %p817_p4 = scmp.eq.s32.totalorder %s554_s15, 0 }
   0x5   : > { %s905_s16 = smov (%p35_p0, %s33_s16), 0  ;;  %s764_s19 = smov [#allocation3]  }
   0x6   : > { %p813_p3 = pnand %p556_p1, %p144_p2  ;;  %s160_s20 = sshll.u32 %s764_s19, 4  ;;  %s161_s20 = int_to_ptr.vmem [resolvable:$true] %s160_s20 }
   0x7   : > { %s898_s18 = scalar_select %p817_p4, 1, 0 }
   0x8   : > { %s897_s17 = scalar_select %p813_p3, 1, 0 }
   0x9   : > { %p669_p5 = pneg %p813_p3  ;;  %s708_s24 = scalar_lea.hbm %s892_s2, 1024 }
   0xa   : > { %p709_p7 = scmp.ne.s32.totalorder %s892_s2, %s708_s24  ;;  %p715_p11 = scmp.lt.u32.totalorder %s708_s24, %s892_s2 }
   0xb   : > { %p825_p6 = pnand %p817_p4, %p669_p5 }
   0xd   : > { %p710_p8 = pneg %p825_p6 }
   0xf   : > { %p711_p9 = pnand %p710_p8, %p709_p7 }
  0x11   : > { %p712_p10 = pneg %p711_p9 }
  0x13   : > { %p717_p12 = pnand %p715_p11, %p712_p10 }
  0x15   : > { %720 = shalt.err (!%p717_p12)
}
  0x16   : > { %s721_s29 = scalar_lea.vmem %s161_s20, 1024  ;;  %p729_p2 = scmp.lt.s32.totalorder %s161_s20, %s161_s20 }
  0x17   : > { %p722_p13 = scmp.ne.s32.totalorder %s161_s20, %s721_s29  ;;  %p730_p5 = scmp.lt.s32.totalorder %s721_s29, %s721_s29 }
  0x19   : > { %p724_p0 = pnand %p722_p13, %p710_p8  ;;  %p731_p4 = por %p730_p5, %p729_p2 }
  0x1b   : > { %p725_p1 = pneg %p724_p0 }
  0x1d   : > { %p732_p3 = pnand %p731_p4, %p725_p1 }
  0x1f   : > { %735 = shalt.err (!%p732_p3)
}
  0x20   : > { %s765_s30 = smov 128   ;;  %s766_s4 = smov 8  }
  0x21   : > { %672 = dma.hbm_to_vmem [thread:$0]  (!%p825_p6), %s892_s2, 1024, %s161_s20, [#allocation4], %s765_s30, %s765_s30, %s766_s4  }
  0x22   : > { %p900_p7 = scmp.ne.s32.totalorder %s897_s17, 0 }
  0x23   : > { %p901_p9 = scmp.ne.s32.totalorder (!%p900_p7), %s898_s18, 0 }
  0x24   : > { %189 = sbr.rel (%p900_p7) target bundleno = 761 (0x2f9), region = 32 }
  0x2b   : > { %749 = dma.done.wait (%p901_p9), [#allocation4], 1024  }
  0x2c   : > { %751 = vsyncadd (%p901_p9), [#allocation4], 4294966272  ;;  %p214_p3 = scmp.lt.s32.totalorder %s754_s12, 1  ;;  %v767_v0 = vmov 0   ;;  %v768_v1 = vmov 0.0|0.0   ;;  %v236_v2 = vlaneseq  ;;  %v294_v6 = vld [vmem:[#allocation3] sm:$0xff] }
  0x2d   : > { %707 = vset.pattern.permute.xlu0 %v767_v0  ;;  %641 = vmatprep.subr.bf16.mxu0 %v768_v1  ;;  %v295_v7 = vld [vmem:[#allocation3 + $0x8] sm:$0xff]  ;;  %v296_v8 = vld [vmem:[#allocation3 + $0x10] sm:$0xff]  ;;  %v297_v9 = vld [vmem:[#allocation3 + $0x18] sm:$0xff]  ;;  %vm769_vm0 = vmmov 0   ;;  %v770_v11 = vmov 0.0   ;;  %vm302_vm13 = vcmask 523264  }
  0x2e   : > { %s907_s12 = smov (!%p214_p3, %s754_s12), 1  ;;  %653 = vmatprep.subr.bf16.mxu1 %v768_v1  ;;  %v865_v3 = vshrl.u32 %v236_v2, 7  ;;  %v642_v10 = vpack.c.bf16 %v295_v7, %v294_v6  ;;  %619 = vmatprep.mubr.msk.f32.mxu0 %vm769_vm0, %v770_v11  ;;  %v645_v13 = vpack.c.bf16 %v297_v9, %v296_v8  ;;  %v298_v16 = vld [vmem:[#allocation3 + $0x20] sm:$0xff]  ;;  %v299_v17 = vld [vmem:[#allocation3 + $0x28] sm:$0xff]  ;;  %v771_v20 = vmov 1.0|1.0  }
  0x2f   : > { %s561_s7 = sshll.u32 %s907_s12, 3  ;;  %s220_s10 = scalar_lea.vmem %s891_s1, %s907_s12  ;;  %638 = vmatprep.mubr.msk.f32.mxu1 %vm769_vm0, %v770_v11  ;;  %v648_v21 = vpack.c.bf16 %v299_v17, %v298_v16  ;;  %v300_v22 = vld [vmem:[#allocation3 + $0x30] sm:$0xff]  ;;  %v301_v23 = vld [vmem:[#allocation3 + $0x38] sm:$0xff]  ;;  %v237_v27 = vand.u32 127, %v236_v2  ;;  %vm232_vm15 = vcmask 64512  }
  0x30   : > { %s217_s17 = scalar_lea.vmem %s890_s0, %s561_s7  ;;  %v564_v5 = vld [vmem:[%s220_s10] ss:$0 sm:$0xff]  ;;  %v249_v12 = vadd.s32 8, %v865_v3  ;;  %643 = vmatpush3.bf16.msra.mxu0 %v642_v10  ;;  %v250_v14 = vadd.s32 16, %v865_v3  ;;  %v251_v15 = vadd.s32 24, %v865_v3  ;;  %v252_v18 = vadd.s32 32, %v865_v3  ;;  %s225_s20 = scalar_lea.vmem %s893_s3, %s561_s7 }
  0x31   : > { %v234_v4 = vld [vmem:[%s217_s17] sm:$0xff]  ;;  %vm270_vm1 = vcmp.eq.s32.totalorder %v865_v3, %v564_v5  ;;  %644 = vmatprep.subr.bf16.mxu0 %v768_v1  ;;  %v253_v19 = vadd.s32 40, %v865_v3  ;;  %v254_v24 = vadd.s32 48, %v865_v3  ;;  %v255_v25 = vadd.s32 56, %v865_v3  ;;  %233 = vst.msk [vmem:[#allocation2] sm:$0xff] %vm232_vm15, %v770_v11 }
  0x32   : > { %242 = vperm.xlu0 %707, %v234_v4   ;;  %vm271_vm2 = vcmp.eq.s32.totalorder %v249_v12, %v564_v5  ;;  %vm272_vm4 = vcmp.eq.s32.totalorder %v250_v14, %v564_v5  ;;  %vm273_vm5 = vcmp.eq.s32.totalorder %v251_v15, %v564_v5  ;;  %vm274_vm7 = vcmp.eq.s32.totalorder %v252_v18, %v564_v5 }
  0x33   : > { %vm654_vm3 = vmpackc.low %vm271_vm2, %vm270_vm1  ;;  %vm275_vm8 = vcmp.eq.s32.totalorder %v253_v19, %v564_v5  ;;  %v651_v26 = vpack.c.bf16 %v301_v23, %v300_v22  ;;  %vm276_vm10 = vcmp.eq.s32.totalorder %v254_v24, %v564_v5  ;;  %vm277_vm11 = vcmp.eq.s32.totalorder %v255_v25, %v564_v5 }
  0x34   : > { %655 = vmatpush3.bf16.msk.msra.mxu1 %vm654_vm3, %v771_v20  ;;  %646 = vmatpush3.bf16.msra.mxu0 %v645_v13  ;;  %vm657_vm6 = vmpackc.low %vm273_vm5, %vm272_vm4  ;;  %vm456_vm0 = vcmp.eq.s32.totalorder %v865_v3, %v237_v27  ;;  %vm462_vm1 = vcmask 7168  }
  0x35   : > { %656 = vmatprep.subr.bf16.mxu1 %v768_v1  ;;  %647 = vmatprep.subr.bf16.mxu0 %v768_v1  ;;  %vm660_vm9 = vmpackc.low %vm275_vm8, %vm274_vm7 }
  0x36   : > { %vm663_vm12 = vmpackc.low %vm277_vm11, %vm276_vm10 }
  0x38   : > { %658 = vmatpush3.bf16.msk.msra.mxu1 %vm657_vm6, %v771_v20  ;;  %649 = vmatpush3.bf16.msra.mxu0 %v648_v21  ;;  %v376_v32 = vld [vmem:[#allocation2] sm:$0xff] }
  0x39   : > { %659 = vmatprep.subr.bf16.mxu1 %v768_v1  ;;  %650 = vmatprep.subr.bf16.mxu0 %v768_v1 }
  0x3c   : > { %661 = vmatpush3.bf16.msk.msra.mxu1 %vm660_vm9, %v771_v20  ;;  %652 = vmatpush3.bf16.msra.mxu0 %v651_v26 }
  0x3d   : > { %662 = vmatprep.subr.bf16.mxu1 %v768_v1 }
  0x40   : > { %664 = vmatpush3.bf16.msk.msra.mxu1 %vm663_vm12, %v771_v20 }
  0xb1   : > { %v243_v28 = vpop.permute.xlu0 %242 }
  0xb2   : > { %vm244_vm14 = vcmp.eq.s32.totalorder %v237_v27, %v243_v28 }
  0xb3   : > { %v563_v29 = vsel %vm244_vm14, 1.0, %v770_v11 }
  0xb4   : > { %620 = vmatmul.mubr.msk.f32.vlgmr.msra.gmra.mrb[0].mxu0 %vm302_vm13, %v563_v29 }
 0x187   : > { %v372_v30 = vpop.f32.mrb[0].mxu0 }
 0x188   : > { %v621_v31 = vpop.f32.mrb[1].mxu0  ;;  %639 = vmatmul.mubr.msk.f32.vlgmr.msra.gmra.mrb[0].mxu1 %vm302_vm13, %v372_v30 }
 0x25b   : > { %v446_v33 = vpop.f32.mrb[0].mxu1 }
 0x25c   : > { %v450_v34 = vadd.f32 %v446_v33, %v376_v32  ;;  %v640_v35 = vpop.f32.mrb[1].mxu1 }
 0x25e   : > { %452 = vst.msk [vmem:[#allocation2] sm:$0xff] %vm232_vm15, %v450_v34 }
 0x265   : > { %v455_v36 = vld [vmem:[#allocation2] sm:$0xff] }
 0x266   : > { %v457_v37 = vsel %vm456_vm0, 0.0, %v455_v36 }
 0x267   : > { %v458_v38 = vsel %vm232_vm15, %v457_v37, 0.0 }
 0x268   : > { %459 = vadd.xlane.f32.xlu0 %v458_v38 }
 0x2f5   : > { %v460_v39 = vpop.xlane.xlu0 %459 }
 0x2f6   : > { %v461_v40 = vmul.f32 0.14285715, %v460_v39 }
 0x2f8   : > { %463 = vst.msk [vmem:[%s225_s20] sm:$0xff] %vm462_vm1, %v461_v40 }
 0x2f9 PF: > { %s14_s14 = sadd.s32 1, %s762_s14   ;;  %s902_s12 = smov %s758_s13 }
 0x2fa   : > { %p11_p4 = scmp.ge.s32.totalorder %s14_s14, 4   ;;  %s903_s13 = smov %s905_s16 }
 0x2fc   :  { %13 = sbr.rel (!%p11_p4) target bundleno = 2 (0x2), region = 79 }
 0x303   :  { %483 = vsyncpa [#allocation4], 1 }
 0x304   :  { %485 = vsyncpa [#allocation4 + $0x1], 1 }

</bundles_post_ra>
